<compile_context>
chip_gen: v7x
topology: tpu7x:2x2x1
jax: 0.10.0
libtpu: 0.0.40
codegen_flags: <defaults>
</compile_context>

<pallas_src>
import jax
import jax.numpy as jnp
from jax.experimental import pallas as pl
from jax.experimental.pallas import tpu as pltpu


def _round_up(x, m):
    return ((x + m - 1) // m) * m


def _attn_pool_kernel(w_ref, h_ref, m_ref, o_ref, m_sc, l_sc, acc_sc):
    # w_ref:  (1, 1, H)    score-projection weight (VMEM-resident, fetched once)
    # h_ref:  (TB, TS, H)  hidden-state tile
    # m_ref:  (TB, 1, TS)  attention-mask tile, int8 (S on lanes)
    # o_ref:  (TB, 1, H)   pooled context vector
    # m_sc/l_sc: (TB,1,1)  f32 running max / running denom
    # acc_sc:    (TB,1,H)  f32 running weighted sum
    ts = pl.program_id(1)

    @pl.when(ts == 0)
    def _():
        m_sc[...] = jnp.full_like(m_sc, -jnp.inf)
        l_sc[...] = jnp.zeros_like(l_sc)
        acc_sc[...] = jnp.zeros_like(acc_sc)

    h = h_ref[...]                                              # (TB, TS, H)
    tb = h.shape[0]
    # Broadcast the shared weight to a per-batch length-1 "query" (vreg copy).
    q = jnp.broadcast_to(w_ref[...], (tb, 1, h.shape[2]))       # (TB, 1, H)

    # Linear(H,1) score projection on the MXU (bias dropped: softmax shift-inv).
    s = jnp.einsum("bqh,bkh->bqk", q, h,
                   preferred_element_type=jnp.float32)          # (TB, 1, TS)
    msk = m_ref[...].astype(jnp.float32)                        # (TB, 1, TS)
    s = jnp.where(msk == 0.0, jnp.float32(-1.0e9), s)

    # Online softmax over the sequence (lane) axis.
    m_prev = m_sc[...]
    m_new = jnp.maximum(m_prev, s.max(axis=-1, keepdims=True))  # (TB,1,1)
    alpha = jnp.exp(m_prev - m_new)
    p = jnp.exp(s - m_new)                                      # (TB,1,TS)
    l_sc[...] = alpha * l_sc[...] + p.sum(axis=-1, keepdims=True)
    acc_sc[...] = alpha * acc_sc[...] + jnp.einsum(
        "bqk,bkh->bqh", p.astype(h.dtype), h,
        preferred_element_type=jnp.float32)                     # (TB,1,H)
    m_sc[...] = m_new

    @pl.when(ts == pl.num_programs(1) - 1)
    def _():
        # Exact divide (once per batch tile); approx reciprocal would be a
        # negligible win and costs score precision vs. the strict reference.
        o_ref[...] = (acc_sc[...] / l_sc[...]).astype(o_ref.dtype)


def attention_pooling(hidden_states, attention_mask, weight, bias):
    """hidden_states: [B, S, H], attention_mask: [B, S], weight: [1, H], bias: [1]."""
    B, S, H = hidden_states.shape
    del bias  # softmax(x + b) == softmax(x): the Linear bias cannot change the output.
    itemsize = jnp.dtype(hidden_states.dtype).itemsize

    # ---- Tile selection (VMEM-budget driven) --------------------------------
    HID_BUF_BUDGET = 8 * 1024 * 1024  # bytes per hidden-tile buffer (x2 double-buffered)

    TB = next(t for t in (8, 4, 2, 1) if B % t == 0)
    # v7x megacore: keep >=2 steps on the "parallel" batch axis whenever B >= 2.
    while TB > 1 and B // TB < 2:
        TB //= 2
    # Huge-H guard: shrink TB until even a TS=128 tile fits the budget.
    while TB > 1 and TB * 128 * H * itemsize > HID_BUF_BUDGET:
        TB //= 2

    S128 = _round_up(S, 128)
    TS = max(128, (HID_BUF_BUDGET // (TB * H * itemsize)) // 128 * 128)
    TS = min(TS, S128)
    S_pad = _round_up(S, TS)

    # ---- Pad the sequence axis (mask padded with 0 => zero contribution) ----
    if S_pad != S:
        pad = S_pad - S
        hidden_states = jnp.pad(hidden_states, ((0, 0), (0, pad), (0, 0)))
        attention_mask = jnp.pad(attention_mask, ((0, 0), (0, pad)))

    # Weight passed once as (1,1,H); mask as int8 (4x less HBM/VMEM than f32).
    w3 = weight.reshape(1, 1, H).astype(hidden_states.dtype)
    mask_i8 = (attention_mask != 0).astype(jnp.int8).reshape(B, 1, S_pad)

    grid = (B // TB, S_pad // TS)

    # ---- VMEM footprint & compiler params -----------------------------------
    hid_blk = TB * TS * H * itemsize
    msk_blk = TB * TS                       # int8
    w_blk = H * itemsize
    out_blk = TB * H * itemsize
    scratch_bytes = TB * (2 + H) * 4
    need = 2 * (hid_blk + msk_blk + w_blk + out_blk) + scratch_bytes
    vmem_limit = int(min(56 * 2 ** 20, max(16 * 2 ** 20, 2 * need)))

    cost = pl.CostEstimate(
        flops=4 * B * S_pad * H,                     # score proj + weighted sum
        transcendentals=B * S_pad,                   # one exp per score
        bytes_accessed=(B * S_pad * H * itemsize     # hidden read
                        + B * S_pad                  # int8 mask
                        + B * H * itemsize           # output
                        + H * itemsize))             # weight

    out3 = pl.pallas_call(
        _attn_pool_kernel,
        out_shape=jax.ShapeDtypeStruct((B, 1, H), hidden_states.dtype),
        grid_spec=pltpu.PrefetchScalarGridSpec(
            num_scalar_prefetch=0,
            grid=grid,
            in_specs=[
                pl.BlockSpec((1, 1, H), lambda bt, ts: (0, 0, 0)),      # weight (fetched once)
                pl.BlockSpec((TB, TS, H), lambda bt, ts: (bt, ts, 0)),  # hidden tile
                pl.BlockSpec((TB, 1, TS), lambda bt, ts: (bt, 0, ts)),  # int8 mask tile
            ],
            out_specs=pl.BlockSpec((TB, 1, H), lambda bt, ts: (bt, 0, 0)),
            scratch_shapes=[
                pltpu.VMEM((TB, 1, 1), jnp.float32),   # running max
                pltpu.VMEM((TB, 1, 1), jnp.float32),   # running denom
                pltpu.VMEM((TB, 1, H), jnp.float32),   # running weighted sum
            ],
        ),
        compiler_params=pltpu.CompilerParams(
            dimension_semantics=("parallel", "arbitrary"),
            vmem_limit_bytes=vmem_limit),
        cost_estimate=cost,
    )(w3, hidden_states, mask_i8)

    return out3.reshape(B, H)


def _reference(hidden_states, attention_mask, weight, bias):
    scores = jnp.einsum("bsh,oh->bso", hidden_states, weight)[..., 0] + bias[0]
    scores = jnp.where(attention_mask == 0, -1.0e9, scores)
    attn = jax.nn.softmax(scores, axis=1)
    return jnp.sum(hidden_states * attn[..., None], axis=1)


if __name__ == "__main__":
    B, S, H = 2, 8, 32

    key = jax.random.PRNGKey(0)
    k_h, k_w, k_b = jax.random.split(key, 3)

    hidden_states = jax.random.normal(k_h, (B, S, H), dtype=jnp.float32)

    # Deterministic mask: batch 0 attends to first 5 tokens, batch 1 to first 7.
    lengths = jnp.array([5, 7], dtype=jnp.int32)
    attention_mask = (jnp.arange(S)[None, :] < lengths[:, None]).astype(jnp.float32)

    # nn.Linear(hidden_size, 1) init: uniform(-1/sqrt(H), 1/sqrt(H)).
    bound = 1.0 / (H ** 0.5)
    weight = jax.random.uniform(k_w, (1, H), minval=-bound, maxval=bound,
                                dtype=jnp.float32)
    bias = jax.random.uniform(k_b, (1,), minval=-bound, maxval=bound,
                              dtype=jnp.float32)

    out = attention_pooling(hidden_states, attention_mask, weight, bias)
    out = jax.block_until_ready(out)

    ref = _reference(hidden_states, attention_mask, weight, bias)
    assert out.shape == (B, H)
    assert jnp.allclose(out, ref, atol=1e-5, rtol=1e-5), "mismatch vs reference"

    print("KERNEL_OK")
</pallas_src>

<mosaic_0001>
module attributes {stable_mosaic.version = 11 : i64} {
  func.func @_attn_pool_kernel(%arg0: i32, %arg1: i32, %arg2: memref<1x1x32xf32, #tpu.memory_space<vmem>>, %arg3: memref<1x128x32xf32, #tpu.memory_space<vmem>>, %arg4: memref<1x1x128xi8, #tpu.memory_space<vmem>>, %arg5: memref<1x1x32xf32, #tpu.memory_space<vmem>>, %arg6: memref<1x1x1xf32, #tpu.memory_space<vmem>>, %arg7: memref<1x1x1xf32, #tpu.memory_space<vmem>>, %arg8: memref<1x1x32xf32, #tpu.memory_space<vmem>>) attributes {dimension_semantics = [#tpu.dimension_semantics<parallel>, #tpu.dimension_semantics<arbitrary>], iteration_bounds = array<i64: 2, 1>, scalar_prefetch = 0 : i64, scratch_operands = 3 : i64, tpu.core_type = #tpu.core_type<tc>, window_params = [{pipeline_mode = #tpu.pipeline_mode<synchronous>, transform_indices = @transform_0, window_bounds = array<i64: 1, 1, 32>}, {transform_indices = @transform_1, window_bounds = array<i64: 1, 128, 32>}, {transform_indices = @transform_2, window_bounds = array<i64: 1, 1, 128>}, {transform_indices = @transform_3, window_bounds = array<i64: 1, 1, 32>}]} {
    %c0_i32 = arith.constant 0 : i32
    %0 = arith.cmpi eq, %arg1, %c0_i32 : i32
    %1 = arith.extui %0 : i1 to i32
    %c0_i32_0 = arith.constant 0 : i32
    %2 = arith.cmpi ne, %1, %c0_i32_0 : i32
    scf.if %2 {
      %cst_34 = arith.constant 0xFF800000 : f32
      %37 = vector.broadcast %cst_34 : f32 to vector<1x1x1xf32>
      %c0_35 = arith.constant 0 : index
      %c0_36 = arith.constant 0 : index
      %c0_37 = arith.constant 0 : index
      %38 = vector.load %arg6[%c0_35, %c0_36, %c0_37] : memref<1x1x1xf32, #tpu.memory_space<vmem>>, vector<1x1x1xf32>
      tpu.vector_store %arg6[%c0_35, %c0_36, %c0_37], %37 {strides = array<i32>} : memref<1x1x1xf32, #tpu.memory_space<vmem>>, vector<1x1x1xf32>,
      %cst_38 = arith.constant 0.000000e+00 : f32
      %39 = vector.broadcast %cst_38 : f32 to vector<1x1x1xf32>
      %c0_39 = arith.constant 0 : index
      %c0_40 = arith.constant 0 : index
      %c0_41 = arith.constant 0 : index
      %40 = vector.load %arg7[%c0_39, %c0_40, %c0_41] : memref<1x1x1xf32, #tpu.memory_space<vmem>>, vector<1x1x1xf32>
      tpu.vector_store %arg7[%c0_39, %c0_40, %c0_41], %39 {strides = array<i32>} : memref<1x1x1xf32, #tpu.memory_space<vmem>>, vector<1x1x1xf32>,
      %cst_42 = arith.constant 0.000000e+00 : f32
      %41 = vector.broadcast %cst_42 : f32 to vector<1x1x32xf32>
      %c0_43 = arith.constant 0 : index
      %c0_44 = arith.constant 0 : index
      %c0_45 = arith.constant 0 : index
      %42 = vector.load %arg8[%c0_43, %c0_44, %c0_45] : memref<1x1x32xf32, #tpu.memory_space<vmem>>, vector<1x1x32xf32>
      tpu.vector_store %arg8[%c0_43, %c0_44, %c0_45], %41 {strides = array<i32>} : memref<1x1x32xf32, #tpu.memory_space<vmem>>, vector<1x1x32xf32>,
    } else {
    }
    %c0 = arith.constant 0 : index
    %c0_1 = arith.constant 0 : index
    %c0_2 = arith.constant 0 : index
    %3 = vector.load %arg3[%c0, %c0_1, %c0_2] : memref<1x128x32xf32, #tpu.memory_space<vmem>>, vector<1x128x32xf32>
    %c0_3 = arith.constant 0 : index
    %c0_4 = arith.constant 0 : index
    %c0_5 = arith.constant 0 : index
    %4 = vector.load %arg2[%c0_3, %c0_4, %c0_5] : memref<1x1x32xf32, #tpu.memory_space<vmem>>, vector<1x1x32xf32>
    "tpu.trace_start"() <{level = 10 : i32, message = "bqh,bkh->bqk"}> : () -> ()
    %cst = arith.constant dense<0.000000e+00> : vector<1x1x128xf32>
    %5 = tpu.matmul %4, %3, %cst {dimension_numbers = #tpu.dot_dimension_numbers<[2], [2], [1], [1], [0, 0, 0, 1, 1, 1], [0], [0]>} : vector<1x1x32xf32>, vector<1x128x32xf32>, vector<1x1x128xf32> -> vector<1x1x128xf32>
    "tpu.trace_stop"() : () -> ()
    %c0_6 = arith.constant 0 : index
    %c0_7 = arith.constant 0 : index
    %c0_8 = arith.constant 0 : index
    %6 = vector.load %arg4[%c0_6, %c0_7, %c0_8] : memref<1x1x128xi8, #tpu.memory_space<vmem>>, vector<1x1x128xi8>
    %7 = arith.sitofp %6 : vector<1x1x128xi8> to vector<1x1x128xf32>
    %cst_9 = arith.constant 0.000000e+00 : f32
    %8 = vector.broadcast %cst_9 : f32 to vector<1x1x128xf32>
    %9 = arith.cmpf oeq, %7, %8 : vector<1x1x128xf32>
    %cst_10 = arith.constant -1.000000e+09 : f32
    %10 = vector.broadcast %cst_10 : f32 to vector<1x1x128xf32>
    %11 = arith.select %9, %10, %5 : vector<1x1x128xi1>, vector<1x1x128xf32>
    %c0_11 = arith.constant 0 : index
    %c0_12 = arith.constant 0 : index
    %c0_13 = arith.constant 0 : index
    %12 = vector.load %arg6[%c0_11, %c0_12, %c0_13] : memref<1x1x1xf32, #tpu.memory_space<vmem>>, vector<1x1x1xf32>
    %cst_14 = arith.constant dense<0xFF800000> : vector<1x1xf32>
    %13 = vector.multi_reduction <maximumf>, %11, %cst_14 [2] : vector<1x1x128xf32> to vector<1x1xf32>
    %14 = vector.shape_cast %13 : vector<1x1xf32> to vector<1x1x1xf32>
    %15 = arith.maximumf %12, %14 : vector<1x1x1xf32>
    %16 = arith.subf %12, %15 : vector<1x1x1xf32>
    %17 = math.exp %16 : vector<1x1x1xf32>
    %18 = vector.broadcast %15 : vector<1x1x1xf32> to vector<1x1x128xf32>
    %19 = arith.subf %11, %18 : vector<1x1x128xf32>
    %20 = math.exp %19 : vector<1x1x128xf32>
    %c0_15 = arith.constant 0 : index
    %c0_16 = arith.constant 0 : index
    %c0_17 = arith.constant 0 : index
    %21 = vector.load %arg7[%c0_15, %c0_16, %c0_17] : memref<1x1x1xf32, #tpu.memory_space<vmem>>, vector<1x1x1xf32>
    %22 = arith.mulf %17, %21 : vector<1x1x1xf32>
    %cst_18 = arith.constant dense<0.000000e+00> : vector<1x1xf32>
    %23 = vector.multi_reduction <add>, %20, %cst_18 [2] : vector<1x1x128xf32> to vector<1x1xf32>
    %24 = vector.shape_cast %23 : vector<1x1xf32> to vector<1x1x1xf32>
    %25 = arith.addf %22, %24 : vector<1x1x1xf32>
    %c0_19 = arith.constant 0 : index
    %c0_20 = arith.constant 0 : index
    %c0_21 = arith.constant 0 : index
    %26 = vector.load %arg7[%c0_19, %c0_20, %c0_21] : memref<1x1x1xf32, #tpu.memory_space<vmem>>, vector<1x1x1xf32>
    tpu.vector_store %arg7[%c0_19, %c0_20, %c0_21], %25 {strides = array<i32>} : memref<1x1x1xf32, #tpu.memory_space<vmem>>, vector<1x1x1xf32>,
    %c0_22 = arith.constant 0 : index
    %c0_23 = arith.constant 0 : index
    %c0_24 = arith.constant 0 : index
    %27 = vector.load %arg8[%c0_22, %c0_23, %c0_24] : memref<1x1x32xf32, #tpu.memory_space<vmem>>, vector<1x1x32xf32>
    %28 = vector.broadcast %17 : vector<1x1x1xf32> to vector<1x1x32xf32>
    %29 = arith.mulf %28, %27 : vector<1x1x32xf32>
    "tpu.trace_start"() <{level = 10 : i32, message = "bqk,bkh->bqh"}> : () -> ()
    %cst_25 = arith.constant dense<0.000000e+00> : vector<1x1x32xf32>
    %30 = tpu.matmul %20, %3, %cst_25 {dimension_numbers = #tpu.dot_dimension_numbers<[2], [1], [1], [2], [0, 0, 0, 1, 1, 2], [0], [0]>} : vector<1x1x128xf32>, vector<1x128x32xf32>, vector<1x1x32xf32> -> vector<1x1x32xf32>
    "tpu.trace_stop"() : () -> ()
    %31 = arith.addf %29, %30 : vector<1x1x32xf32>
    %c0_26 = arith.constant 0 : index
    %c0_27 = arith.constant 0 : index
    %c0_28 = arith.constant 0 : index
    %32 = vector.load %arg8[%c0_26, %c0_27, %c0_28] : memref<1x1x32xf32, #tpu.memory_space<vmem>>, vector<1x1x32xf32>
    tpu.vector_store %arg8[%c0_26, %c0_27, %c0_28], %31 {strides = array<i32>} : memref<1x1x32xf32, #tpu.memory_space<vmem>>, vector<1x1x32xf32>,
    %c0_29 = arith.constant 0 : index
    %c0_30 = arith.constant 0 : index
    %c0_31 = arith.constant 0 : index
    %33 = vector.load %arg6[%c0_29, %c0_30, %c0_31] : memref<1x1x1xf32, #tpu.memory_space<vmem>>, vector<1x1x1xf32>
    tpu.vector_store %arg6[%c0_29, %c0_30, %c0_31], %15 {strides = array<i32>} : memref<1x1x1xf32, #tpu.memory_space<vmem>>, vector<1x1x1xf32>,
    %c0_i32_32 = arith.constant 0 : i32
    %34 = arith.cmpi eq, %arg1, %c0_i32_32 : i32
    %35 = arith.extui %34 : i1 to i32
    %c0_i32_33 = arith.constant 0 : i32
    %36 = arith.cmpi ne, %35, %c0_i32_33 : i32
    scf.if %36 {
      %c0_34 = arith.constant 0 : index
      %c0_35 = arith.constant 0 : index
      %c0_36 = arith.constant 0 : index
      %37 = vector.load %arg8[%c0_34, %c0_35, %c0_36] : memref<1x1x32xf32, #tpu.memory_space<vmem>>, vector<1x1x32xf32>
      %c0_37 = arith.constant 0 : index
      %c0_38 = arith.constant 0 : index
      %c0_39 = arith.constant 0 : index
      %38 = vector.load %arg7[%c0_37, %c0_38, %c0_39] : memref<1x1x1xf32, #tpu.memory_space<vmem>>, vector<1x1x1xf32>
      %39 = vector.broadcast %38 : vector<1x1x1xf32> to vector<1x1x32xf32>
      %40 = arith.divf %37, %39 : vector<1x1x32xf32>
      %c0_40 = arith.constant 0 : index
      %c0_41 = arith.constant 0 : index
      %c0_42 = arith.constant 0 : index
      %41 = vector.load %arg5[%c0_40, %c0_41, %c0_42] : memref<1x1x32xf32, #tpu.memory_space<vmem>>, vector<1x1x32xf32>
      tpu.vector_store %arg5[%c0_40, %c0_41, %c0_42], %40 {strides = array<i32>} : memref<1x1x32xf32, #tpu.memory_space<vmem>>, vector<1x1x32xf32>,
    } else {
    }
    return
  }
  func.func @transform_0(%arg0: i32, %arg1: i32) -> (i32, i32, i32) {
    %c0_i32 = arith.constant 0 : i32
    %c0_i32_0 = arith.constant 0 : i32
    %c0_i32_1 = arith.constant 0 : i32
    %c0_i32_2 = arith.constant 0 : i32
    return %c0_i32, %c0_i32_0, %c0_i32_1 : i32, i32, i32
  }
  func.func @transform_1(%arg0: i32, %arg1: i32) -> (i32, i32, i32) {
    %c0_i32 = arith.constant 0 : i32
    %c0_i32_0 = arith.constant 0 : i32
    return %arg0, %arg1, %c0_i32 : i32, i32, i32
  }
  func.func @transform_2(%arg0: i32, %arg1: i32) -> (i32, i32, i32) {
    %c0_i32 = arith.constant 0 : i32
    %c0_i32_0 = arith.constant 0 : i32
    return %arg0, %c0_i32, %arg1 : i32, i32, i32
  }
  func.func @transform_3(%arg0: i32, %arg1: i32) -> (i32, i32, i32) {
    %c0_i32 = arith.constant 0 : i32
    %c0_i32_0 = arith.constant 0 : i32
    %c0_i32_1 = arith.constant 0 : i32
    return %arg0, %c0_i32, %c0_i32_0 : i32, i32, i32
  }
}

</mosaic_0001>

<bundles_post_ra>
// kernel: tpu_custom_call.1
= control target key start
LH: loop header
LB: loop body
LE: loop exit
PB: predicated region body
PF: predicated region fallthrough
CT: control target
= control target key end

     0   :  { %8 = vsyncpa [#allocation6], 0  ;;  %s1153_s0 = inlined_call_operand.vmem [shape: f32[1,1,32], index: 0, kind: input, shape index: {}]   ;;  %s1154_s1 = inlined_call_operand.vmem [shape: f32[2,128,32], index: 1, kind: input, shape index: {}]   ;;  %s1155_s2 = inlined_call_operand.vmem [shape: s8[2,1,128], index: 2, kind: input, shape index: {}]   ;;  %s1156_s3 = inlined_call_operand.hbm [shape: f32[2,1,32], index: 3, kind: output, shape index: {}]  }
   0x1   :  { %10 = vsyncpa [#allocation6 + $0x1], 0  ;;  %s961_s12 = smov 0   ;;  %s963_s13 = smov 0  }
   0x2   :  { %s965_s14 = smov 0   ;;  %s967_s15 = smov 0  }
   0x3   :  { %s969_s16 = smov 0   ;;  %s971_s17 = smov 0  }
   0x4 LB: > { %s599_s18 = sadd.s32 4294967295, %s933_s17   ;;  %s600_s19 = sadd.s32 4294967294, %s933_s17   ;;  %s933_s17 = sphi %s971_s17, %s16_s17   ;;  %s929_s16 = sphi %s969_s16, %s1165_s16   ;;  %s925_s15 = sphi %s967_s15, %s1164_s15   ;;  %s921_s14 = sphi %s965_s14, %s1163_s14   ;;  %s917_s13 = sphi %s963_s13, %s1162_s13   ;;  %s913_s12 = sphi %s961_s12, %s1161_s12  }
   0x5   : > { %s28_s20 = sadd.s32 1, %s929_s16  ;;  %s112_s21 = sadd.s32 1, %s921_s14 }
   0x6   : > { %p30_p0 = scmp.ge.s32.totalorder %s28_s20, 2  ;;  %p122_p1 = scmp.ne.s32.totalorder %s921_s14, %s917_s13 }
   0x7   : > { %p123_p2 = scmp.eq.s32.totalorder %s599_s18, 1  ;;  %p128_p3 = scmp.ne.s32.totalorder %s917_s13, %s913_s12 }
   0x8   : > { %s1167_s20 = smov (%p30_p0, %s28_s20), 0  ;;  %p129_p5 = scmp.eq.s32.totalorder %s600_s19, 1 }
   0x9   : > { %p1001_p4 = por %p123_p2, %p122_p1  ;;  %s109_s23 = ssub.s32 %s929_s16, %s1167_s20 }
   0xa   : > { %p603_p6 = scmp.ge.s32.totalorder %s933_s17, 1  ;;  %p110_p7 = scmp.eq.s32.totalorder %s109_s23, 0 }
   0xb   : > { %p1008_p8 = por %p129_p5, %p128_p3  ;;  %p172_p9 = scmp.lt.s32.totalorder %s933_s17, 3 }
   0xc   : > { %s1014_s25 = scalar_select %p110_p7, %s921_s14, %s112_s21  }
   0xd   : > { %p173_p10 = pnand %p603_p6, %p172_p9 }
   0xe   : > { %p206_p11 = scmp.lt.s32.totalorder (!%p173_p10), %s925_s15, 1  ;;  %vm225_vm0 = vcmask (!%p173_p10), 0   ;;  %v935_v0 = vmov (!%p173_p10), 0.0|0.0   ;;  %v936_v1 = vmov (!%p173_p10), 0.0   ;;  %vm937_vm1 = vmmov (!%p173_p10), 0   ;;  %s203_s9 = sand.u32 (!%p173_p10), 1, %s917_s13  }
   0xf   : > { %176 = sbr.rel (%p173_p10) target bundleno = 905 (0x389), region = 32  ;;  %731 = vmatprep.subr.bf16.mxu0 (!%p173_p10), %v935_v0  ;;  %227 = vst.msk [vmem:[#allocation3] sm:$0x1] (!%p173_p10), %vm225_vm0, %v936_v1  ;;  %763 = vmatprep.subr.bf16.mxu1 (!%p173_p10), %v935_v0  ;;  %vm247_vm2 = vcmask (!%p173_p10), 261120   ;;  %v246_v27 = vld [vmem:[%s1153_s0] sm:$0x1] (!%p173_p10)  ;;  %v388_v41 = vlaneseq (!%p173_p10) }
  0x10   : > { %693 = vmatprep.mubr.msk.f32.mxu0 (!%p173_p10), %vm937_vm1, %v936_v1  ;;  %728 = vmatprep.mubr.msk.f32.mxu1 (!%p173_p10), %vm937_vm1, %v936_v1  ;;  %vm1036_vm3 = vmpackc.low (!%p173_p10), %vm247_vm2, %vm247_vm2  ;;  %v938_v28 = vmov (!%p173_p10), -inf   ;;  %vm375_vm5 = vcmask (!%p173_p10), 1040384   ;;  %v939_v36 = vmov (!%p173_p10), 0   ;;  %vm228_vm6 = vcmask (!%p173_p10), 253952   ;;  %s623_s10 = sshll.u32 (!%p173_p10), %s925_s15, 4  ;;  %s204_s11 = scalar_lea.vmem (!%p173_p10), [#allocation5], %s203_s9 }
  0x11   : > { %226 = vst.msk [vmem:[#allocation2] sm:$0x1] (!%p173_p10), %vm225_vm0, %v938_v28  ;;  %847 = vset.pattern.permute.xlu0 (!%p173_p10), %v939_v36  ;;  %848 = vset.pattern.permute.xlu1 (!%p173_p10), %v939_v36  ;;  %v389_v42 = vshrl.u32 (!%p173_p10), %v388_v41, 7  ;;  %s518_s18 = sshll.u32 (!%p173_p10), %s204_s11, 4  ;;  %s1105_s23 = scalar_lea.hbm (!%p173_p10), %s1156_s3, %s623_s10  ;;  %s1107_s18 = int_to_ptr.vmem [resolvable:$true] %s518_s18 }
  0x12   : > { %229 = vst.msk [vmem:[#allocation4] sm:$0x1] (!%p173_p10), %vm228_vm6, %v936_v1 }
  0x13   : > { %v390_v43 = vsub.s32 (!%p173_p10), 0, %v389_v42 }
  0x16   : > { %s1022_s26 = scalar_select %p206_p11, %s925_s15, 1  ;;  %v395_v52 = vld [vmem:[#allocation3] sm:$0x1] }
  0x17   : > { %s940_s15 = smov [#allocation5]  }
  0x18   : > { %s626_s27 = sshll.u32 %s1022_s26, 7  ;;  %s220_s8 = scalar_lea.vmem %s1155_s2, %s1022_s26  ;;  %v374_v37 = vld [vmem:[#allocation2] sm:$0x1] }
  0x19   : > { %s1030_s30 = scalar_lea.vmem %s1154_s1, %s626_s27  ;;  %v369_v29 = vld [vmem:[%s220_s8] sm:$0x1]  ;;  %v403_v59 = vld [vmem:[#allocation4] sm:$0x1]  ;;  %s506_s26 = scalar_lea.sflag [#allocation6], %s203_s9 }
  0x1a   : > { %v230_v2 = vld [vmem:[%s1030_s30] sm:$0xff]  ;;  %v231_v3 = vld [vmem:[%s1030_s30 + $0x8] sm:$0xff]  ;;  %v232_v6 = vld [vmem:[%s1030_s30 + $0x10] sm:$0xff]  ;;  %v370_v30 = vunpack.c.0.s8 %v369_v29  ;;  %s855_s27 = scalar_lea.vmem %s1107_s18, 16  ;;  %s859_s28 = sshll.u32 %s940_s15, 4  ;;  %s860_s28 = int_to_ptr.vmem [resolvable:$false] %s859_s28 }
  0x1b   : > { %v732_v5 = vpack.c.bf16 %v231_v3, %v230_v2  ;;  %v233_v7 = vld [vmem:[%s1030_s30 + $0x18] sm:$0xff]  ;;  %v234_v9 = vld [vmem:[%s1030_s30 + $0x20] sm:$0xff]  ;;  %v235_v10 = vld [vmem:[%s1030_s30 + $0x28] sm:$0xff]  ;;  %p856_p12 = scmp.ne.s32.totalorder %s1107_s18, %s855_s27  ;;  %s861_s29 = scalar_lea.vmem %s860_s28, 32 }
  0x1c   : > { %v736_v8 = vpack.c.bf16 %v233_v7, %v232_v6  ;;  %v740_v11 = vpack.c.bf16 %v235_v10, %v234_v9  ;;  %v236_v12 = vld [vmem:[%s1030_s30 + $0x30] sm:$0xff]  ;;  %v237_v13 = vld [vmem:[%s1030_s30 + $0x38] sm:$0xff]  ;;  %v238_v15 = vld [vmem:[%s1030_s30 + $0x40] sm:$0xff]  ;;  %v371_v31 = vcvt.s32.f32 %v370_v30  ;;  %p862_p1 = scmp.lt.s32.totalorder %s1107_s18, %s860_s28  ;;  %p863_p2 = scmp.lt.s32.totalorder %s861_s29, %s855_s27 }
  0x1d   : > { %734 = vmatpush3.bf16.xpose.msk.msra.mxu0 %vm1036_vm3, %v732_v5  ;;  %765 = vmatpush3.bf16.msra.mxu1 %v732_v5  ;;  %v744_v14 = vpack.c.bf16 %v237_v13, %v236_v12  ;;  %v239_v16 = vld [vmem:[%s1030_s30 + $0x48] sm:$0xff]  ;;  %v240_v18 = vld [vmem:[%s1030_s30 + $0x50] sm:$0xff]  ;;  %v241_v19 = vld [vmem:[%s1030_s30 + $0x58] sm:$0xff]  ;;  %p857_p13 = pnand %p856_p12, %p1001_p4 }
  0x1e   : > { %735 = vmatprep.subr.bf16.mxu0 %v935_v0  ;;  %766 = vmatprep.subr.bf16.mxu1 %v935_v0  ;;  %v748_v17 = vpack.c.bf16 %v239_v16, %v238_v15  ;;  %v752_v20 = vpack.c.bf16 %v241_v19, %v240_v18  ;;  %v242_v21 = vld [vmem:[%s1030_s30 + $0x60] sm:$0xff]  ;;  %v243_v22 = vld [vmem:[%s1030_s30 + $0x68] sm:$0xff]  ;;  %v244_v24 = vld [vmem:[%s1030_s30 + $0x70] sm:$0xff]  ;;  %vm372_vm4 = vcmp.eq.f32.partialorder %v371_v31, 0.0  ;;  %p864_p3 = por %p863_p2, %p862_p1 }
  0x1f   : > { %v756_v23 = vpack.c.bf16 %v243_v22, %v242_v21  ;;  %v245_v25 = vld [vmem:[%s1030_s30 + $0x78] sm:$0xff]  ;;  %p858_p0 = pneg %p857_p13 }
  0x20   : > { %v760_v26 = vpack.c.bf16 %v245_v25, %v244_v24 }
  0x21   : > { %768 = vmatpush3.bf16.msra.mxu1 %v736_v8  ;;  %p865_p5 = pnand %p864_p3, %p858_p0 }
  0x22   : > { %769 = vmatprep.subr.bf16.mxu1 %v935_v0 }
  0x25   : > { %738 = vmatpush3.bf16.xpose.msk.msra.mxu0 %vm1036_vm3, %v736_v8  ;;  %771 = vmatpush3.bf16.msra.mxu1 %v740_v11 }
  0x26   : > { %739 = vmatprep.subr.bf16.mxu0 %v935_v0  ;;  %772 = vmatprep.subr.bf16.mxu1 %v935_v0 }
  0x29   : > { %774 = vmatpush3.bf16.msra.mxu1 %v744_v14 }
  0x2a   : > { %775 = vmatprep.subr.bf16.mxu1 %v935_v0 }
  0x2d   : > { %742 = vmatpush3.bf16.xpose.msk.msra.mxu0 %vm1036_vm3, %v740_v11  ;;  %777 = vmatpush3.bf16.msra.mxu1 %v748_v17 }
  0x2e   : > { %743 = vmatprep.subr.bf16.mxu0 %v935_v0  ;;  %778 = vmatprep.subr.bf16.mxu1 %v935_v0 }
  0x31   : > { %780 = vmatpush3.bf16.msra.mxu1 %v752_v20 }
  0x32   : > { %781 = vmatprep.subr.bf16.mxu1 %v935_v0 }
  0x35   : > { %746 = vmatpush3.bf16.xpose.msk.msra.mxu0 %vm1036_vm3, %v744_v14  ;;  %783 = vmatpush3.bf16.msra.mxu1 %v756_v23 }
  0x36   : > { %747 = vmatprep.subr.bf16.mxu0 %v935_v0  ;;  %784 = vmatprep.subr.bf16.mxu1 %v935_v0 }
  0x39   : > { %786 = vmatpush3.bf16.msra.mxu1 %v760_v26 }
  0x3d   : > { %750 = vmatpush3.bf16.xpose.msk.msra.mxu0 %vm1036_vm3, %v748_v17 }
  0x3e   : > { %751 = vmatprep.subr.bf16.mxu0 %v935_v0 }
  0x45   : > { %754 = vmatpush3.bf16.xpose.msk.msra.mxu0 %vm1036_vm3, %v752_v20 }
  0x46   : > { %755 = vmatprep.subr.bf16.mxu0 %v935_v0 }
  0x4d   : > { %758 = vmatpush3.bf16.xpose.msk.msra.mxu0 %vm1036_vm3, %v756_v23 }
  0x4e   : > { %759 = vmatprep.subr.bf16.mxu0 %v935_v0 }
  0x55   : > { %762 = vmatpush3.bf16.xpose.msk.msra.mxu0 %vm1036_vm3, %v760_v26 }
  0x5c   : > { %694 = vmatmul.mubr.msk.f32.vlgmr.msra.gmra.mrb[0].mxu0 %vm247_vm2, %v246_v27 }
 0x12f   : > { %v365_v32 = vpop.f32.mrb[0].mxu0 }
 0x130   : > { %v373_v33 = vsel %vm372_vm4, -1e+09, %v365_v32  ;;  %v695_v34 = vpop.f32.mrb[1].mxu0 }
 0x131   : > { %v376_v35 = vsel %vm375_vm5, %v373_v33, -inf }
 0x132   : > { %377 = vmax.xlane.f32.xlu0 %v376_v35 }
 0x1bf   : > { %v378_v38 = vpop.xlane.xlu0 %377 }
 0x1c0   : > { %v379_v39 = vmax.f32 %v374_v37, %v378_v38 }
 0x1c2   : > { %v380_v40 = vsub.f32 %v374_v37, %v379_v39  ;;  %487 = vst.msk [vmem:[#allocation2] sm:$0x1] %vm225_vm0, %v379_v39  ;;  %385 = vperm.xlu0 %847, %v379_v39  }
 0x1c4   : > { %v381_v50 = vmul.f32 1.442695, %v380_v40 }
 0x241   : > { %v386_v44 = vpop.permute.xlu0 %385 }
 0x242   : > { %v391_v45 = vrot.slane %v386_v44, %v390_v43 }
 0x244   : > { %v392_v46 = vsub.f32 %v373_v33, %v391_v45 }
 0x246   : > { %v393_v47 = vmul.f32 1.442695, %v392_v46 }
 0x248   : > { %849 = vpow2.f32 %v393_v47 }
 0x249   : > { %851 = vpow2.f32 %v381_v50 }
 0x252   : > { %v850_v48 = vpop.eup %849 }
 0x253   : > { %729 = vmatmul.mubr.f32.vlgmr.msra.gmra.mrb[0].mxu1 %v850_v48  ;;  %v397_v49 = vsel %vm375_vm5, %v850_v48, 0.0  ;;  %v852_v51 = vpop.eup %851 }
 0x254   : > { %398 = vadd.xlane.f32.xlu1 %v397_v49  ;;  %v396_v53 = vmul.f32 %v852_v51, %v395_v52 }
 0x265   : > { %406 = vperm.xlu1 %848, %v852_v51  }
 0x2e1   : > { %v399_v54 = vpop.xlane.xlu1 %398 }
 0x2e2   : > { %v400_v55 = vadd.f32 %v399_v54, %v396_v53 }
 0x2e4   : > { %402 = vst.msk [vmem:[#allocation3] sm:$0x1] %vm225_vm0, %v400_v55 }
 0x2e5   : > { %v407_v57 = vpop.permute.xlu1 %406 }
 0x2e6   : > { %v412_v58 = vrot.slane %v407_v57, %v390_v43 }
 0x2e8   : > { %v413_v60 = vmul.f32 %v412_v58, %v403_v59 }
 0x2eb   : > { %v492_v56 = vld [vmem:[#allocation3] sm:$0x1] }
 0x2ec   : > { %495 = vperm.xlu1 %848, %v492_v56  }
 0x326   : > { %v480_v61 = vpop.f32.mrb[0].mxu1 }
 0x327   : > { %v484_v62 = vadd.f32 %v480_v61, %v413_v60  ;;  %v730_v63 = vpop.f32.mrb[1].mxu1 }
 0x329   : > { %486 = vst.msk [vmem:[#allocation4] sm:$0x1] %vm228_vm6, %v484_v62 }
 0x330   : > { %v491_v3 = vld [vmem:[#allocation4] sm:$0x1] }
 0x36b   : > { %v496_v0 = vpop.permute.xlu1 %495 }
 0x36c   : > { %v501_v1 = vrot.slane %v496_v0, %v390_v43 }
 0x36e   : > { %853 = vrcp.f32 %v501_v1 }
 0x378   : > { %v854_v2 = vpop.eup %853 }
 0x379   : > { %v503_v4 = vmul.f32 %v854_v2, %v491_v3 }
 0x37b   : > { %504 = vst.msk [vmem:[%s204_s11] sm:$0x1] %vm228_vm6, %v503_v4 }
 0x37c   : > { %868 = shalt.err (!%p865_p5)
}
 0x37d   : > { %s869_s30 = scalar_lea.hbm %s1105_s23, 16  ;;  %s873_s6 = scalar_lea.hbm %s1156_s3, 32 }
 0x37e   : > { %p870_p6 = scmp.ne.s32.totalorder %s1105_s23, %s869_s30  ;;  %p874_p10 = scmp.lt.u32.totalorder %s1105_s23, %s1156_s3 }
 0x37f   : > { %p875_p11 = scmp.lt.u32.totalorder %s873_s6, %s869_s30  ;;  %p877_p13 = scmp.lt.u32.totalorder %s869_s30, %s1105_s23 }
 0x380   : > { %p871_p7 = pnand %p870_p6, %p1001_p4 }
 0x381   : > { %p876_p12 = por %p875_p11, %p874_p10 }
 0x382   : > { %p872_p9 = pneg %p871_p7 }
 0x383   : > { %p878_p0 = por %p877_p13, %p876_p12 }
 0x385   : > { %p879_p1 = pnand %p878_p0, %p872_p9 }
 0x387   : > { %882 = shalt.err (!%p879_p1)
}
 0x388   : > { %787 = dma.vmem_to_hbm [thread:$0]  (%p1001_p4), %s1107_s18, 16, %s1105_s23, %s506_s26  }
 0x389 PF: > { %p793_p2 = scmp.ge.s32.totalorder %s933_s17, 2  ;;  %s530_s9 = sand.u32 1, %s913_s12  }
 0x38a   : > { %s531_s10 = scalar_lea.sflag [#allocation6], %s530_s9 }
 0x38b   : > { %p790_p3 = pnand %p793_p2, %p1008_p8 }
 0x38d   : > { %908 = dma.done.wait (!%p790_p3), %s531_s10, 16  }
 0x38e   : > { %910 = vsyncadd (!%p790_p3), %s531_s10, 4294967280  ;;  %s16_s17 = sadd.s32 1, %s933_s17   ;;  %s1161_s12 = smov %s917_s13 }
 0x38f   : > { %p13_p5 = scmp.ge.s32.totalorder %s16_s17, 4   ;;  %s1162_s13 = smov %s921_s14 }
 0x390   : > { %s1163_s14 = smov %s1014_s25  ;;  %s1164_s15 = smov %s929_s16 }
 0x391   : > { %s1165_s16 = smov %s1167_s20  ;;  %15 = sbr.rel (!%p13_p5) target bundleno = 4 (0x4), region = 78 }
 0x398   :  { %535 = vsyncpa [#allocation6], 1 }
 0x399   :  { %537 = vsyncpa [#allocation6 + $0x1], 1 }

</bundles_post_ra>
